<compile_context>
chip_gen: v7x
topology: tpu7x:2x2x1
jax: 0.10.0
libtpu: 0.0.40
codegen_flags: <defaults>
</compile_context>

<pallas_src>
import jax
import jax.numpy as jnp
from jax.experimental import pallas as pl
from jax.experimental.pallas import tpu as pltpu


def get_dct_filter(width: int) -> jnp.ndarray:
    """Deterministic DCT basis, identical to the PyTorch buffer init."""
    v = jnp.arange(width, dtype=jnp.float32)[:, None]
    j = jnp.arange(width, dtype=jnp.float32)[None, :]
    base = jnp.cos(jnp.pi * (0.5 + v) * j / width) / jnp.sqrt(
        jnp.asarray(width, jnp.float32)
    )
    scale = jnp.where(j != 0, jnp.sqrt(jnp.asarray(2.0, jnp.float32)), 1.0)
    return (base * scale).astype(jnp.float32)  # (width, width): [v, j]


def _idct_channel_mix_kernel(x_ref, w_ref, o_ref):
    # x_ref: (C, t_hw) VMEM tile, w_ref: (C, C) VMEM weight, o_ref: (C, t_hw).
    # One dense (C,C) x (C,t_hw) contraction on the MXU + one unmasked
    # lane-dense store -> frees the VALU and the vst slot entirely.
    o_ref[...] = jnp.dot(
        w_ref[...], x_ref[...], preferred_element_type=jnp.float32
    ).astype(o_ref.dtype)


def _vmem_capacity_bytes() -> int:
    try:
        return int(pltpu.get_tpu_info().vmem_capacity_bytes)
    except Exception:
        return 64 << 20  # conservative fallback (v7x per-TC physical VMEM)


def _pick_spatial_tile(hw: int, c: int, n: int, itemsize: int = 4,
                       max_lanes: int = 131072) -> int:
    """Spatial tile: multiple of 128, sized from a per-generation VMEM budget."""
    if hw <= 128:
        return hw  # full-extent block is always legal

    # Resident VMEM ~= (in + out) * double-buffer * c * t_hw * itemsize.
    budget = min(_vmem_capacity_bytes() // 3, 48 << 20)
    lanes_cap = budget // (4 * c * itemsize)
    lanes_cap = min(lanes_cap, max_lanes)
    t = max((lanes_cap // 128) * 128, 128)

    hw_pad = pl.cdiv(hw, 128) * 128
    t = min(t, hw_pad)

    # v7x megacore: if batch == 1 and we'd emit a single spatial block, split
    # into two so both TensorCores get work (no effect on v5e/v6e).
    if n == 1 and t >= hw_pad and hw_pad >= 256:
        t = pl.cdiv(hw_pad // 2, 128) * 128
    return t


def fast_idct2d_spatial_transform_x(x_nchw: jnp.ndarray,
                                    weight: jnp.ndarray) -> jnp.ndarray:
    """x_nchw: (N, C, H, W) float32, weight: (C, C) DCT filter [v, j]."""
    n, c, h, w = x_nchw.shape
    assert weight.shape == (c, c)
    hw = h * w

    x_flat = x_nchw.reshape(n, c, hw)        # free reshape, stays NCHW in HBM
    itemsize = x_flat.dtype.itemsize
    t_hw = _pick_spatial_tile(hw, c, n, itemsize)
    grid = (n, pl.cdiv(hw, t_hw))

    # Scoped VMEM budget matching the chosen tiles (in + out, double-buffered).
    resident = 4 * c * t_hw * itemsize + c * c * 4
    vmem_limit = min(max(2 * resident, 16 << 20),
                     (_vmem_capacity_bytes() * 3) // 4)

    out_flat = pl.pallas_call(
        _idct_channel_mix_kernel,
        out_shape=jax.ShapeDtypeStruct((n, c, hw), x_flat.dtype),
        grid_spec=pltpu.PrefetchScalarGridSpec(
            num_scalar_prefetch=0,
            grid=grid,
            in_specs=[
                pl.BlockSpec((None, c, t_hw), lambda i, s: (i, 0, s)),
                pl.BlockSpec((c, c), lambda i, s: (0, 0)),
            ],
            out_specs=pl.BlockSpec((None, c, t_hw), lambda i, s: (i, 0, s)),
        ),
        compiler_params=pltpu.CompilerParams(
            dimension_semantics=("parallel", "parallel"),
            vmem_limit_bytes=int(vmem_limit),
        ),
    )(x_flat, weight)

    return out_flat.reshape(n, c, h, w)


if __name__ == "__main__":
    # Small shapes consistent with the module: width == channels == 4
    N, C, H, W = 2, 4, 16, 16
    key = jax.random.PRNGKey(0)
    x = jax.random.normal(key, (N, C, H, W), dtype=jnp.float32)

    weight = get_dct_filter(C)

    out = fast_idct2d_spatial_transform_x(x, weight)
    out = jax.block_until_ready(out)

    # Pure-JAX reference of the 1x1 conv (channel mix) for sanity checking.
    ref = jnp.einsum("vj,njhw->nvhw", weight, x)
    assert out.shape == (N, C, H, W)
    assert jnp.allclose(out, ref, atol=1e-5, rtol=1e-5), "mismatch vs reference"

    print("KERNEL_OK")
</pallas_src>

<mosaic_0001>
module attributes {stable_mosaic.version = 11 : i64} {
  func.func @_idct_channel_mix_kernel(%arg0: i32, %arg1: i32, %arg2: memref<1x4x256xf32, #tpu.memory_space<vmem>>, %arg3: memref<4x4xf32, #tpu.memory_space<vmem>>, %arg4: memref<1x4x256xf32, #tpu.memory_space<vmem>>) attributes {dimension_semantics = [#tpu.dimension_semantics<parallel>, #tpu.dimension_semantics<parallel>], iteration_bounds = array<i64: 2, 1>, scalar_prefetch = 0 : i64, scratch_operands = 0 : i64, tpu.core_type = #tpu.core_type<tc>, window_params = [{transform_indices = @transform_0, window_bounds = array<i64: 1, 4, 256>}, {pipeline_mode = #tpu.pipeline_mode<synchronous>, transform_indices = @transform_1, window_bounds = array<i64: 4, 4>}, {transform_indices = @transform_2, window_bounds = array<i64: 1, 4, 256>}]} {
    %c0 = arith.constant 0 : index
    %c0_0 = arith.constant 0 : index
    %0 = vector.load %arg3[%c0, %c0_0] : memref<4x4xf32, #tpu.memory_space<vmem>>, vector<4x4xf32>
    %c0_1 = arith.constant 0 : index
    %c0_2 = arith.constant 0 : index
    %c0_3 = arith.constant 0 : index
    %1 = vector.load %arg2[%c0_1, %c0_2, %c0_3] : memref<1x4x256xf32, #tpu.memory_space<vmem>>, vector<1x4x256xf32>
    %2 = vector.shape_cast %1 : vector<1x4x256xf32> to vector<4x256xf32>
    %cst = arith.constant dense<0.000000e+00> : vector<4x256xf32>
    %3 = tpu.matmul %0, %2, %cst {dimension_numbers = #tpu.dot_dimension_numbers<[1], [0], [0], [1], [0, 0, 1, 1], [], []>} : vector<4x4xf32>, vector<4x256xf32>, vector<4x256xf32> -> vector<4x256xf32>
    %c0_4 = arith.constant 0 : index
    %c0_5 = arith.constant 0 : index
    %c0_6 = arith.constant 0 : index
    %4 = vector.load %arg4[%c0_4, %c0_5, %c0_6] : memref<1x4x256xf32, #tpu.memory_space<vmem>>, vector<1x4x256xf32>
    %5 = vector.shape_cast %4 : vector<1x4x256xf32> to vector<4x256xf32>
    %6 = vector.shape_cast %3 : vector<4x256xf32> to vector<1x4x256xf32>
    tpu.vector_store %arg4[%c0_4, %c0_5, %c0_6], %6 {strides = array<i32>} : memref<1x4x256xf32, #tpu.memory_space<vmem>>, vector<1x4x256xf32>,
    return
  }
  func.func @transform_0(%arg0: i32, %arg1: i32) -> (i32, i32, i32) {
    %c0_i32 = arith.constant 0 : i32
    %c0_i32_0 = arith.constant 0 : i32
    return %arg0, %c0_i32, %arg1 : i32, i32, i32
  }
  func.func @transform_1(%arg0: i32, %arg1: i32) -> (i32, i32) {
    %c0_i32 = arith.constant 0 : i32
    %c0_i32_0 = arith.constant 0 : i32
    %c0_i32_1 = arith.constant 0 : i32
    return %c0_i32, %c0_i32_0 : i32, i32
  }
  func.func @transform_2(%arg0: i32, %arg1: i32) -> (i32, i32, i32) {
    %c0_i32 = arith.constant 0 : i32
    %c0_i32_0 = arith.constant 0 : i32
    return %arg0, %c0_i32, %arg1 : i32, i32, i32
  }
}

</mosaic_0001>

<bundles_post_ra>
// kernel: tpu_custom_call.1
= control target key start
LH: loop header
LB: loop body
LE: loop exit
PB: predicated region body
PF: predicated region fallthrough
CT: control target
= control target key end

     0   :  { %7 = vsyncpa [#allocation3], 0  ;;  %s871_s0 = inlined_call_operand.hbm [shape: f32[2,4,256], index: 0, kind: input, shape index: {}]   ;;  %s872_s1 = inlined_call_operand.hbm [shape: f32[4,4], index: 1, kind: input, shape index: {}]   ;;  %s873_s2 = inlined_call_operand.hbm [shape: f32[2,4,256], index: 2, kind: output, shape index: {}]  }
   0x1   :  { %9 = vsyncpa [#allocation3 + $0x1], 0 }
   0x2   :  { %10 = vsyncpa [#allocation6], 0 }
   0x3   :  { %11 = vsyncpa [#allocation4], 0 }
   0x4   :  { %13 = vsyncpa [#allocation4 + $0x1], 0  ;;  %s655_s9 = smov 0   ;;  %s657_s10 = smov 0  }
   0x5   :  { %s659_s11 = smov 0   ;;  %s661_s12 = smov 0  }
   0x6   :  { %s663_s13 = smov 0   ;;  %s665_s14 = smov 0  }
   0x7 LB: > { %s393_s15 = sadd.s32 4294967295, %s634_s14   ;;  %s394_s16 = sadd.s32 4294967294, %s634_s14   ;;  %s634_s14 = sphi %s665_s14, %s19_s14   ;;  %s630_s13 = sphi %s663_s13, %s898_s13   ;;  %s626_s12 = sphi %s661_s12, %s897_s12   ;;  %s622_s11 = sphi %s659_s11, %s896_s11   ;;  %s618_s10 = sphi %s657_s10, %s895_s10   ;;  %s614_s9 = sphi %s655_s9, %s894_s9  }
   0x8   : > { %p53_p0 = scmp.ne.s32.totalorder %s618_s10, %s614_s9  ;;  %p689_p1 = scmp.eq.s32.totalorder %s393_s15, 0 }
   0x9   : > { %p693_p2 = scmp.eq.s32.totalorder %s393_s15, 1  ;;  %p106_p3 = scmp.eq.s32.totalorder %s394_s16, 1 }
   0xa   : > { %s878_s17 = scalar_select %p689_p1, 1, 0 }
   0xb   : > { %s879_s18 = scalar_select %p693_p2, 1, 0 }
   0xc   : > { %p699_p4 = por %p689_p1, %p53_p0  ;;  %p395_p5 = scmp.ge.s32.totalorder %s634_s14, 1 }
   0xd   : > { %p704_p6 = por %p106_p3, %p53_p0  ;;  %p113_p7 = scmp.lt.s32.totalorder %s634_s14, 3 }
   0xe   : > { %s880_s19 = scalar_select %p699_p4, 1, 0 }
   0xf   : > { %s881_s20 = scalar_select %p704_p6, 1, 0 }
  0x10   : > { %p709_p8 = pnand %p395_p5, %p113_p7  ;;  %s636_s22 = smov [#allocation5]  }
  0x11   : > { %s126_s23 = sshll.u32 %s636_s22, 4  ;;  %s31_s25 = sadd.s32 1, %s630_s13  ;;  %s127_s23 = int_to_ptr.vmem [resolvable:$true] %s126_s23 }
  0x12   : > { %s882_s21 = scalar_select %p709_p8, 1, 0 }
  0x13   : > { %p423_p10 = pneg %p709_p8  ;;  %s40_s26 = sadd.s32 1, %s622_s11 }
  0x14   : > { %p724_p12 = scmp.ge.s32.totalorder %s31_s25, 2  ;;  %s490_s30 = scalar_lea.hbm %s872_s1, 64 }
  0x15   : > { %p718_p11 = pnand %p423_p10, %p689_p1  ;;  %p491_p13 = scmp.ne.s32.totalorder %s872_s1, %s490_s30 }
  0x16   : > { %s884_s27 = scalar_select %p724_p12, 1, 0 }
  0x17   : > { %p492_p0 = pneg %p718_p11  ;;  %p497_p7 = scmp.lt.u32.totalorder %s490_s30, %s872_s1 }
  0x19   : > { %p493_p3 = pnand %p492_p0, %p491_p13 }
  0x1b   : > { %p494_p5 = pneg %p493_p3 }
  0x1d   : > { %p499_p10 = pnand %p497_p7, %p494_p5 }
  0x1f   : > { %502 = shalt.err (!%p499_p10)
}
  0x20   : > { %s503_s7 = scalar_lea.vmem %s127_s23, 64  ;;  %p511_p4 = scmp.lt.s32.totalorder %s127_s23, %s127_s23 }
  0x21   : > { %p504_p9 = scmp.ne.s32.totalorder %s127_s23, %s503_s7  ;;  %p512_p8 = scmp.lt.s32.totalorder %s503_s7, %s503_s7 }
  0x23   : > { %p506_p6 = pnand %p504_p9, %p492_p0  ;;  %p513_p2 = por %p512_p8, %p511_p4 }
  0x25   : > { %p507_p1 = pneg %p506_p6 }
  0x27   : > { %p514_p12 = pnand %p513_p2, %p507_p1 }
  0x29   : > { %517 = shalt.err (!%p514_p12)
}
  0x2a   : > { %426 = dma.hbm_to_vmem [thread:$0]  (!%p718_p11), %s872_s1, 64, %s127_s23, [#allocation6]  }
  0x2b   : > { %p885_p4 = scmp.ne.s32.totalorder %s884_s27, 0  ;;  %p47_p1 = scmp.ne.s32.totalorder %s622_s11, %s618_s10 }
  0x2c   : > { %p48_p2 = scmp.eq.s32.totalorder %s634_s14, 0  ;;  %p436_p6 = scmp.lt.s32.totalorder %s634_s14, 2 }
  0x2d   : > { %s900_s25 = smov (%p885_p4, %s31_s25), 0  ;;  %p886_p12 = scmp.ne.s32.totalorder %s879_s18, 0 }
  0x2e   : > { %s35_s16 = ssub.s32 %s630_s13, %s900_s25  ;;  %p49_p9 = por %p48_p2, %p47_p1 }
  0x2f   : > { %p38_p8 = scmp.eq.s32.totalorder %s35_s16, 0  ;;  %p756_p13 = por %p886_p12, %p47_p1 }
  0x30   : > { %s137_s24 = sand.u32 1, %s622_s11   ;;  %s413_s27 = sshll.u32 %s630_s13, 7 }
  0x31   : > { %s764_s28 = scalar_select %p38_p8, %s622_s11, %s40_s26  }
  0x32   : > { %s398_s23 = sshll.u32 %s137_s24, 3  ;;  %s770_s3 = scalar_lea.hbm %s871_s0, %s413_s27 }
  0x33   : > { %s141_s18 = scalar_lea.vmem [#allocation2], %s398_s23  ;;  %p774_p11 = pnand %p436_p6, %p49_p9 }
  0x34   : > { %s151_s4 = sshll.u32 %s141_s18, 4  ;;  %s138_s26 = scalar_lea.sflag [#allocation3], %s137_s24  ;;  %s772_s4 = int_to_ptr.vmem [resolvable:$true] %s151_s4 }
  0x35   : > { %s518_s6 = scalar_lea.hbm %s770_s3, 128  ;;  %p520_p3 = pneg %p774_p11 }
  0x36   : > { %p519_p0 = scmp.ne.s32.totalorder %s770_s3, %s518_s6  ;;  %s523_s15 = scalar_lea.hbm %s871_s0, 256 }
  0x37   : > { %p524_p10 = scmp.lt.u32.totalorder %s770_s3, %s871_s0  ;;  %p525_p4 = scmp.lt.u32.totalorder %s523_s15, %s518_s6 }
  0x38   : > { %p521_p5 = pnand %p520_p3, %p519_p0  ;;  %p527_p2 = scmp.lt.u32.totalorder %s518_s6, %s770_s3 }
  0x39   : > { %p526_p1 = por %p525_p4, %p524_p10 }
  0x3a   : > { %p522_p7 = pneg %p521_p5 }
  0x3b   : > { %p528_p6 = por %p527_p2, %p526_p1 }
  0x3d   : > { %p529_p8 = pnand %p528_p6, %p522_p7 }
  0x3f   : > { %532 = shalt.err (!%p529_p8)
}
  0x40   : > { %s533_s24 = scalar_lea.vmem %s772_s4, 128  ;;  %s637_s27 = smov [#allocation2]  }
  0x41   : > { %p534_p9 = scmp.ne.s32.totalorder %s772_s4, %s533_s24  ;;  %s538_s29 = sshll.u32 %s637_s27, 4  ;;  %s539_s29 = int_to_ptr.vmem [resolvable:$false] %s538_s29 }
  0x42   : > { %s540_s30 = scalar_lea.vmem %s539_s29, 256  ;;  %p541_p5 = scmp.lt.s32.totalorder %s772_s4, %s539_s29 }
  0x43   : > { %p536_p12 = pnand %p534_p9, %p520_p3  ;;  %p542_p10 = scmp.lt.s32.totalorder %s540_s30, %s533_s24 }
  0x45   : > { %p537_p0 = pneg %p536_p12  ;;  %p543_p4 = por %p542_p10, %p541_p5 }
  0x47   : > { %p544_p1 = pnand %p543_p4, %p537_p0 }
  0x49   : > { %547 = shalt.err (!%p544_p1)
}
  0x4a   : > { %430 = dma.hbm_to_vmem [thread:$0]  (!%p774_p11), %s770_s3, 128, %s772_s4, %s138_s26  }
  0x4b   : > { %p889_p7 = scmp.ne.s32.totalorder %s882_s21, 0 }
  0x4c   : > { %s806_s18 = sand.u32 (!%p889_p7), 1, %s618_s10   ;;  %p890_p3 = scmp.ne.s32.totalorder (!%p889_p7), %s880_s19, 0 }
  0x4d   : > { %160 = sbr.rel (%p889_p7) target bundleno = 322 (0x142), region = 28  ;;  %s402_s6 = sshll.u32 (!%p889_p7), %s806_s18, 3 }
  0x4e   : > { %s163_s7 = scalar_lea.sflag (!%p889_p7), [#allocation3], %s806_s18  ;;  %s166_s8 = scalar_lea.vmem (!%p889_p7), [#allocation2], %s402_s6 }
  0x54   : > { %601 = dma.done.wait (%p890_p3), %s163_s7, 128  }
  0x55   : > { %603 = vsyncadd (%p890_p3), %s163_s7, 4294967168  ;;  %p891_p2 = scmp.ne.s32.totalorder %s878_s17, 0 }
  0x57   : > { %605 = dma.done.wait (%p891_p2), [#allocation6], 64  }
  0x58   : > { %607 = vsyncadd (%p891_p2), [#allocation6], 4294967232  ;;  %v638_v0 = vmov 0.0   ;;  %v194_v1 = vld [vmem:[%s166_s8] sm:$0xff]  ;;  %vm201_vm0 = vcmask 1043456   ;;  %vm197_vm1 = vcmask 31744  }
  0x59   : > { %270 = vmatprep.mubr.f32.mxu0 %v638_v0  ;;  %v196_v2 = vcombine.high %v194_v1, %v194_v1  ;;  %v193_v3 = vld [vmem:[#allocation5] sm:$0xf]  ;;  %s414_s19 = sshll.u32 %s626_s12, 7  ;;  %s190_s21 = scalar_lea.vmem [#allocation7], %s402_s6 }
  0x5a   : > { %s299_s3 = sshll.u32 %s190_s21, 4  ;;  %s822_s5 = scalar_lea.hbm %s873_s2, %s414_s19  ;;  %s824_s3 = int_to_ptr.vmem [resolvable:$true] %s299_s3 }
  0x5b   : > { %405 = vmatprep.subr.msk.mxu0 %vm201_vm0, %v196_v2  ;;  %s283_s26 = scalar_lea.sflag [#allocation4], %s806_s18  ;;  %s548_s15 = scalar_lea.vmem %s824_s3, 128 }
  0x5c   : > { %406 = vmatpush1.msk.msra.mxu0 %vm201_vm0, %v194_v1  ;;  %p549_p11 = scmp.ne.s32.totalorder %s824_s3, %s548_s15  ;;  %s639_s12 = smov [#allocation7]  }
  0x5d   : > { %407 = vmatmul.mubr.msk.f32.vlgmr.msra.gmra.mrb[0].mxu0 %vm197_vm1, %v193_v3  ;;  %s552_s16 = sshll.u32 %s639_s12, 4  ;;  %s553_s16 = int_to_ptr.vmem [resolvable:$false] %s552_s16 }
  0x5e   : > { %p550_p6 = pnand %p549_p11, %p756_p13  ;;  %s554_s23 = scalar_lea.vmem %s553_s16, 256 }
  0x5f   : > { %p555_p9 = scmp.lt.s32.totalorder %s824_s3, %s553_s16  ;;  %p556_p12 = scmp.lt.s32.totalorder %s554_s23, %s548_s15 }
  0x60   : > { %p551_p8 = pneg %p550_p6 }
  0x61   : > { %p557_p0 = por %p556_p12, %p555_p9 }
  0x63   : > { %p558_p5 = pnand %p557_p0, %p551_p8 }
 0x130   : > { %v272_v4 = vpop.f32.mrb[0].mxu0 }
 0x131   : > { %v274_v5 = vpop.f32.mrb[1].mxu0 }
 0x132   : > { %v279_v6 = vcombine.low %v272_v4, %v274_v5 }
 0x134   : > { %281 = vst [vmem:[%s190_s21] sm:$0xff] %v279_v6 }
 0x135   : > { %561 = shalt.err (!%p558_p5)
}
 0x136   : > { %s562_s24 = scalar_lea.hbm %s822_s5, 128  ;;  %s566_s30 = scalar_lea.hbm %s873_s2, 256 }
 0x137   : > { %p563_p10 = scmp.ne.s32.totalorder %s822_s5, %s562_s24  ;;  %p567_p7 = scmp.lt.u32.totalorder %s822_s5, %s873_s2 }
 0x138   : > { %p568_p3 = scmp.lt.u32.totalorder %s566_s30, %s562_s24  ;;  %p570_p11 = scmp.lt.u32.totalorder %s562_s24, %s822_s5 }
 0x139   : > { %p564_p4 = pnand %p563_p10, %p756_p13 }
 0x13a   : > { %p569_p2 = por %p568_p3, %p567_p7 }
 0x13b   : > { %p565_p1 = pneg %p564_p4 }
 0x13c   : > { %p571_p6 = por %p570_p11, %p569_p2 }
 0x13e   : > { %p572_p8 = pnand %p571_p6, %p565_p1 }
 0x140   : > { %575 = shalt.err (!%p572_p8)
}
 0x141   : > { %421 = dma.vmem_to_hbm [thread:$0]  (%p756_p13), %s824_s3, 128, %s822_s5, %s283_s26  }
 0x142 PF: > { %s311_s7 = sand.u32 1, %s614_s9   ;;  %p892_p9 = scmp.ne.s32.totalorder %s881_s20, 0 }
 0x143   : > { %p893_p12 = scmp.ge.s32.totalorder %s634_s14, 2  ;;  %s312_s8 = scalar_lea.sflag [#allocation4], %s311_s7 }
 0x145   : > { %p432_p0 = pnand %p893_p12, %p892_p9 }
 0x147   : > { %609 = dma.done.wait (!%p432_p0), %s312_s8, 128  }
 0x148   : > { %611 = vsyncadd (!%p432_p0), %s312_s8, 4294967168  ;;  %s19_s14 = sadd.s32 1, %s634_s14   ;;  %s894_s9 = smov %s618_s10 }
 0x149   : > { %p16_p5 = scmp.ge.s32.totalorder %s19_s14, 4   ;;  %s895_s10 = smov %s622_s11 }
 0x14a   : > { %s896_s11 = smov %s764_s28  ;;  %s897_s12 = smov %s630_s13 }
 0x14b   : > { %s898_s13 = smov %s900_s25  ;;  %18 = sbr.rel (!%p16_p5) target bundleno = 7 (0x7), region = 77 }
 0x152   :  { %317 = vsyncpa [#allocation3], 1 }
 0x153   :  { %319 = vsyncpa [#allocation3 + $0x1], 1 }
 0x154   :  { %320 = vsyncpa [#allocation6], 1 }
 0x155   :  { %321 = vsyncpa [#allocation4], 1 }
 0x156   :  { %323 = vsyncpa [#allocation4 + $0x1], 1 }

</bundles_post_ra>
